<compile_context>
chip_gen: v6e
topology: v6e:2x2x1
jax: 0.10.0
libtpu: 0.0.40
codegen_flags: <defaults>
</compile_context>

<pallas_src>
import jax
import jax.numpy as jnp
from jax.experimental import pallas as pl
from jax.experimental.pallas import tpu as pltpu


def _round_up(a, b):
    return (a + b - 1) // b * b


# ----------------------------------------------------------------------------
# Fused kernel: pooling reduction + fused 2-layer MLP (both paths) + sigmoid,
# all on a VMEM-resident (K, tm, C) tile.
# ----------------------------------------------------------------------------
def _fcam_kernel(xw_ref, w1_ref, b1_ref, w2_ref, b2_ref, o_ref):
    xw = xw_ref[...]                                # (K, tm, C) f32
    avg = jnp.mean(xw, axis=0)                      # (tm, C) — AvgPool2d((5,12))
    mx = jnp.max(xw, axis=0)                        # (tm, C) — MaxPool2d((5,12))

    # Lane-concat the two pooled features (each exactly 128 lanes wide -> free
    # vreg placement, no cross-lane shuffles).
    feat = jnp.concatenate([avg, mx], axis=1)       # (tm, 2C)

    # Layer 1 of BOTH paths in one MXU op: block-diagonal weights keep the two
    # paths independent: feat @ [[W1a,0],[0,W1m]] == [avg@W1a | mx@W1m].
    h = jnp.dot(feat, w1_ref[...], preferred_element_type=jnp.float32) + b1_ref[...]
    h = jnp.maximum(h, 0.0)                         # ReLU

    # Layer 2 of BOTH paths in one MXU op: [h_a|h_m] @ [W2a;W2m] == h_a@W2a + h_m@W2m
    y = jnp.dot(h, w2_ref[...], preferred_element_type=jnp.float32) + b2_ref[...]

    # sigmoid(y) = 1 / (1 + exp(-y)); the divide rides the EUP slot.
    o_ref[...] = pl.reciprocal(1.0 + jnp.exp(-y), approx=True)


def fcam_forward(x, params, tm=None):
    """x: (B, C, H, W) NCHW.  params: {'avg': (w1,b1,w2,b2), 'max': (...)}
    with PyTorch Conv2d 1x1 weight shapes (out,in,1,1) / bias (out,)."""
    B, C, H, W = x.shape
    PH, PW = 5, 12                                  # pooling kernel == stride
    Ho, Wo = H // PH, W // PW
    M = B * Ho * Wo
    K = PH * PW

    # One host-side rearrangement (single XLA copy, no data inflation):
    # pooling windows become the leading axis, channels land on lanes.
    xw = (x[:, :, :Ho * PH, :Wo * PW]
          .reshape(B, C, Ho, PH, Wo, PW)
          .transpose(3, 5, 0, 2, 4, 1)
          .reshape(K, M, C)
          .astype(jnp.float32))

    (w1a, b1a, w2a, b2a) = params["avg"]
    (w1m, b1m, w2m, b2m) = params["max"]
    O = w1a.shape[0]

    W1a = w1a[:, :, 0, 0].T.astype(jnp.float32)     # (C, O)
    W1m = w1m[:, :, 0, 0].T.astype(jnp.float32)     # (C, O)
    W2a = w2a[:, :, 0, 0].T.astype(jnp.float32)     # (O, C)
    W2m = w2m[:, :, 0, 0].T.astype(jnp.float32)     # (O, C)

    Z = jnp.zeros((C, O), jnp.float32)
    W1_bd = jnp.block([[W1a, Z], [Z, W1m]])         # (2C, 2O) block-diagonal
    B1 = jnp.concatenate([b1a, b1m]).reshape(1, 2 * O).astype(jnp.float32)
    W2_cat = jnp.concatenate([W2a, W2m], axis=0)    # (2O, C)
    B2 = (b2a + b2m).reshape(1, C).astype(jnp.float32)

    # Row tiling: sublane-aligned, capped at 128 so the double-buffered input
    # block fits default scoped VMEM on all chips; >=2 grid steps whenever
    # possible so the v7x megacore can split the grid.
    M8 = _round_up(M, 8)
    if tm is None:
        tm = min(128, _round_up(max(M8 // 2, 8), 8)) if M8 >= 16 else M8
    Mp = _round_up(M8, tm)
    if Mp != M:
        xw = jnp.pad(xw, ((0, 0), (0, Mp - M), (0, 0)))

    out = pl.pallas_call(
        _fcam_kernel,
        out_shape=jax.ShapeDtypeStruct((Mp, C), jnp.float32),
        grid=(Mp // tm,),
        in_specs=[
            pl.BlockSpec((K, tm, C), lambda i: (0, i, 0)),      # pooled-window tile
            pl.BlockSpec((2 * C, 2 * O), lambda i: (0, 0)),     # fused layer-1 weights
            pl.BlockSpec((1, 2 * O), lambda i: (0, 0)),         # fused layer-1 bias
            pl.BlockSpec((2 * O, C), lambda i: (0, 0)),         # fused layer-2 weights
            pl.BlockSpec((1, C), lambda i: (0, 0)),             # fused layer-2 bias
        ],
        out_specs=pl.BlockSpec((tm, C), lambda i: (i, 0)),
        compiler_params=pltpu.CompilerParams(
            dimension_semantics=("parallel",)),
    )(xw, W1_bd, B1, W2_cat, B2)

    # (M, C) -> NCHW
    return out[:M].reshape(B, Ho, Wo, C).transpose(0, 3, 1, 2)


# ----------------------------------------------------------------------------
# Pure-JAX reference (mirrors the PyTorch forward) for a correctness check.
# ----------------------------------------------------------------------------
def fcam_ref(x, params):
    B, C, H, W = x.shape
    Ho, Wo = H // 5, W // 12
    xc = x[:, :, :Ho * 5, :Wo * 12].reshape(B, C, Ho, 5, Wo, 12)
    avg = xc.mean(axis=(3, 5))
    mx = xc.max(axis=(3, 5))

    def path(f, w1, b1, w2, b2):
        h = jnp.einsum("bchw,oc->bohw", f, w1[:, :, 0, 0]) + b1[None, :, None, None]
        h = jnp.maximum(h, 0.0)
        return jnp.einsum("bohw,co->bchw", h, w2[:, :, 0, 0]) + b2[None, :, None, None]

    y = path(avg, *params["avg"]) + path(mx, *params["max"])
    return jax.nn.sigmoid(y)


if __name__ == "__main__":
    key = jax.random.PRNGKey(0)
    ks = jax.random.split(key, 9)

    # Small shapes consistent with the module: pooling kernel is (5,12) so
    # H % 5 == 0, W % 12 == 0; FCAM is a channel-attention block so channels
    # carry the content (C=128 keeps every store fully lane-dense).
    B, C_in, C_mid, H, W = 4, 128, 32, 10, 24
    x = jax.random.normal(ks[0], (B, C_in, H, W), dtype=jnp.float32)

    def conv_w(k, o, i):
        return 0.1 * jax.random.normal(k, (o, i, 1, 1), dtype=jnp.float32)

    def conv_b(k, o):
        return 0.1 * jax.random.normal(k, (o,), dtype=jnp.float32)

    params = {
        "avg": (conv_w(ks[1], C_mid, C_in), conv_b(ks[2], C_mid),
                conv_w(ks[3], C_in, C_mid), conv_b(ks[4], C_in)),
        "max": (conv_w(ks[5], C_mid, C_in), conv_b(ks[6], C_mid),
                conv_w(ks[7], C_in, C_mid), conv_b(ks[8], C_in)),
    }

    fwd = jax.jit(fcam_forward)
    out = fwd(x, params)
    jax.block_until_ready(out)

    assert out.shape == (B, C_in, H // 5, W // 12), out.shape
    ref = fcam_ref(x, params)
    err = float(jnp.max(jnp.abs(out - ref)))
    assert err < 1e-2, f"max abs error {err}"   # approx reciprocal in sigmoid
    print("KERNEL_OK")
</pallas_src>

<mosaic_0001>
module attributes {stable_mosaic.version = 11 : i64} {
  func.func @_fcam_kernel(%arg0: i32, %arg1: memref<60x8x128xf32, #tpu.memory_space<vmem>>, %arg2: memref<256x64xf32, #tpu.memory_space<vmem>>, %arg3: memref<1x64xf32, #tpu.memory_space<vmem>>, %arg4: memref<64x128xf32, #tpu.memory_space<vmem>>, %arg5: memref<1x128xf32, #tpu.memory_space<vmem>>, %arg6: memref<8x128xf32, #tpu.memory_space<vmem>>) attributes {dimension_semantics = [#tpu.dimension_semantics<parallel>], iteration_bounds = array<i64: 2>, scalar_prefetch = 0 : i64, scratch_operands = 0 : i64, tpu.core_type = #tpu.core_type<tc>, window_params = [{transform_indices = @transform_0, window_bounds = array<i64: 60, 8, 128>}, {pipeline_mode = #tpu.pipeline_mode<synchronous>, transform_indices = @transform_1, window_bounds = array<i64: 256, 64>}, {pipeline_mode = #tpu.pipeline_mode<synchronous>, transform_indices = @transform_2, window_bounds = array<i64: 1, 64>}, {pipeline_mode = #tpu.pipeline_mode<synchronous>, transform_indices = @transform_3, window_bounds = array<i64: 64, 128>}, {pipeline_mode = #tpu.pipeline_mode<synchronous>, transform_indices = @transform_4, window_bounds = array<i64: 1, 128>}, {transform_indices = @transform_5, window_bounds = array<i64: 8, 128>}]} {
    %c0 = arith.constant 0 : index
    %c0_0 = arith.constant 0 : index
    %c0_1 = arith.constant 0 : index
    %0 = vector.load %arg1[%c0, %c0_0, %c0_1] : memref<60x8x128xf32, #tpu.memory_space<vmem>>, vector<60x8x128xf32>
    %cst = arith.constant dense<0.000000e+00> : vector<8x128xf32>
    %1 = vector.multi_reduction <add>, %0, %cst [0] : vector<60x8x128xf32> to vector<8x128xf32>
    %cst_2 = arith.constant 6.000000e+01 : f32
    %2 = vector.broadcast %cst_2 : f32 to vector<8x128xf32>
    %3 = arith.divf %1, %2 : vector<8x128xf32>
    %cst_3 = arith.constant dense<0xFF800000> : vector<8x128xf32>
    %4 = vector.multi_reduction <maximumf>, %0, %cst_3 [0] : vector<60x8x128xf32> to vector<8x128xf32>
    %5 = tpu.concatenate %3, %4 in 1 : vector<8x128xf32>, vector<8x128xf32> -> vector<8x256xf32>
    %c0_4 = arith.constant 0 : index
    %c0_5 = arith.constant 0 : index
    %6 = vector.load %arg2[%c0_4, %c0_5] : memref<256x64xf32, #tpu.memory_space<vmem>>, vector<256x64xf32>
    %cst_6 = arith.constant dense<0.000000e+00> : vector<8x64xf32>
    %7 = tpu.matmul %5, %6, %cst_6 {dimension_numbers = #tpu.dot_dimension_numbers<[1], [0], [0], [1], [0, 0, 1, 1], [], []>} : vector<8x256xf32>, vector<256x64xf32>, vector<8x64xf32> -> vector<8x64xf32>
    %c0_7 = arith.constant 0 : index
    %c0_8 = arith.constant 0 : index
    %8 = vector.load %arg3[%c0_7, %c0_8] : memref<1x64xf32, #tpu.memory_space<vmem>>, vector<1x64xf32>
    %9 = vector.broadcast %8 : vector<1x64xf32> to vector<8x64xf32>
    %10 = arith.addf %7, %9 : vector<8x64xf32>
    %cst_9 = arith.constant 0.000000e+00 : f32
    %11 = vector.broadcast %cst_9 : f32 to vector<8x64xf32>
    %12 = arith.maximumf %10, %11 : vector<8x64xf32>
    %c0_10 = arith.constant 0 : index
    %c0_11 = arith.constant 0 : index
    %13 = vector.load %arg4[%c0_10, %c0_11] : memref<64x128xf32, #tpu.memory_space<vmem>>, vector<64x128xf32>
    %cst_12 = arith.constant dense<0.000000e+00> : vector<8x128xf32>
    %14 = tpu.matmul %12, %13, %cst_12 {dimension_numbers = #tpu.dot_dimension_numbers<[1], [0], [0], [1], [0, 0, 1, 1], [], []>} : vector<8x64xf32>, vector<64x128xf32>, vector<8x128xf32> -> vector<8x128xf32>
    %c0_13 = arith.constant 0 : index
    %c0_14 = arith.constant 0 : index
    %15 = vector.load %arg5[%c0_13, %c0_14] : memref<1x128xf32, #tpu.memory_space<vmem>>, vector<1x128xf32>
    %16 = vector.broadcast %15 : vector<1x128xf32> to vector<8x128xf32>
    %17 = arith.addf %14, %16 : vector<8x128xf32>
    %cst_15 = arith.constant 0.000000e+00 : f32
    %18 = vector.broadcast %cst_15 : f32 to vector<8x128xf32>
    %19 = arith.subf %18, %17 : vector<8x128xf32>
    %20 = math.exp %19 : vector<8x128xf32>
    %cst_16 = arith.constant 1.000000e+00 : f32
    %21 = vector.broadcast %cst_16 : f32 to vector<8x128xf32>
    %22 = arith.addf %21, %20 : vector<8x128xf32>
    %23 = tpu.reciprocal %22 {approx = true} : vector<8x128xf32> -> vector<8x128xf32>
    %c0_17 = arith.constant 0 : index
    %c0_18 = arith.constant 0 : index
    %24 = vector.load %arg6[%c0_17, %c0_18] : memref<8x128xf32, #tpu.memory_space<vmem>>, vector<8x128xf32>
    tpu.vector_store %arg6[%c0_17, %c0_18], %23 {strides = array<i32>} : memref<8x128xf32, #tpu.memory_space<vmem>>, vector<8x128xf32>,
    return
  }
  func.func @transform_0(%arg0: i32) -> (i32, i32, i32) {
    %c0_i32 = arith.constant 0 : i32
    %c0_i32_0 = arith.constant 0 : i32
    %c0_i32_1 = arith.constant 0 : i32
    return %c0_i32, %arg0, %c0_i32_0 : i32, i32, i32
  }
  func.func @transform_1(%arg0: i32) -> (i32, i32) {
    %c0_i32 = arith.constant 0 : i32
    %c0_i32_0 = arith.constant 0 : i32
    %c0_i32_1 = arith.constant 0 : i32
    return %c0_i32, %c0_i32_0 : i32, i32
  }
  func.func @transform_2(%arg0: i32) -> (i32, i32) {
    %c0_i32 = arith.constant 0 : i32
    %c0_i32_0 = arith.constant 0 : i32
    %c0_i32_1 = arith.constant 0 : i32
    return %c0_i32, %c0_i32_0 : i32, i32
  }
  func.func @transform_3(%arg0: i32) -> (i32, i32) {
    %c0_i32 = arith.constant 0 : i32
    %c0_i32_0 = arith.constant 0 : i32
    %c0_i32_1 = arith.constant 0 : i32
    return %c0_i32, %c0_i32_0 : i32, i32
  }
  func.func @transform_4(%arg0: i32) -> (i32, i32) {
    %c0_i32 = arith.constant 0 : i32
    %c0_i32_0 = arith.constant 0 : i32
    %c0_i32_1 = arith.constant 0 : i32
    return %c0_i32, %c0_i32_0 : i32, i32
  }
  func.func @transform_5(%arg0: i32) -> (i32, i32) {
    %c0_i32 = arith.constant 0 : i32
    %c0_i32_0 = arith.constant 0 : i32
    return %arg0, %c0_i32 : i32, i32
  }
}

</mosaic_0001>

<bundles_post_ra>
// kernel: fcam_forward.1
= control target key start
LH: loop header
LB: loop body
LE: loop exit
PB: predicated region body
PF: predicated region fallthrough
CT: control target
= control target key end

     0   :  { %10 = vsyncpa [#allocation4], 0  ;;  %s1644_s0 = inlined_call_operand.vmem [shape: f32[60,16,128], index: 0, kind: input, shape index: {}]   ;;  %s1645_s1 = inlined_call_operand.vmem [shape: f32[256,64], index: 1, kind: input, shape index: {}]   ;;  %s1646_s2 = inlined_call_operand.vmem [shape: f32[1,64], index: 2, kind: input, shape index: {}]   ;;  %s1647_s3 = inlined_call_operand.vmem [shape: f32[64,128], index: 3, kind: input, shape index: {}]   ;;  %s1648_s4 = inlined_call_operand.vmem [shape: f32[1,128], index: 4, kind: input, shape index: {}]   ;;  %s1649_s5 = inlined_call_operand.hbm [shape: f32[16,128], index: 5, kind: output, shape index: {}]  }
   0x1   :  { %12 = vsyncpa [#allocation4 + $0x1], 0  ;;  %s1176_s18 = smov 0   ;;  %s1178_s19 = smov 0  }
   0x2   :  { %s1180_s20 = smov 0   ;;  %s1182_s21 = smov 0  }
   0x3 LB: > { %s957_s22 = sadd.s32 4294967295, %s1141_s21   ;;  %s958_s23 = sadd.s32 4294967294, %s1141_s21   ;;  %s1141_s21 = sphi %s1182_s21, %s1655_s21   ;;  %s1137_s20 = sphi %s1180_s20, %s1654_s20   ;;  %s1133_s19 = sphi %s1178_s19, %s1653_s19   ;;  %s1129_s18 = sphi %s1176_s18, %s1652_s18  }
   0x4   : > { %s1199_s24 = sadd.s32 1, %s1141_s21   ;;  %s25_s25 = sadd.s32 1, %s1137_s20 }
   0x5   : > { %s22_s26 = ssub.s32 %s1141_s21, %s1199_s24  ;;  %p32_p0 = scmp.ne.s32.totalorder %s1137_s20, %s1133_s19 }
   0x6   : > { %p23_p1 = scmp.eq.s32.totalorder %s22_s26, 0  ;;  %p33_p2 = scmp.eq.s32.totalorder %s1141_s21, 0 }
   0x7   : > { %p146_p3 = scmp.eq.s32.totalorder %s957_s22, 1  ;;  %p151_p4 = scmp.ne.s32.totalorder %s1133_s19, %s1129_s18 }
   0x8   : > { %s1212_s27 = scalar_select %p23_p1, %s1137_s20, %s25_s25  }
   0x9   : > { %p34_p5 = por %p33_p2, %p32_p0  ;;  %p1214_p6 = por %p146_p3, %p32_p0 }
   0xa   : > { %p152_p7 = scmp.eq.s32.totalorder %s958_s23, 1  ;;  %p960_p9 = scmp.ge.s32.totalorder %s1141_s21, 2 }
   0xc   : > { %p1218_p8 = por %p152_p7, %p151_p4  ;;  %180 = sbr.rel (%p960_p9) target bundleno = 51 (0x33), region = 32 }
  0x11   : > { %183 = sbr.rel (!%p34_p5) target bundleno = 51 (0x33), region = 36  ;;  %s185_s30 = sand.u32 (%p34_p5), 1, %s1137_s20  }
  0x12   : > { %s961_s6 = sshll.u32 (%p34_p5), %s1141_s21, 3  ;;  %s1034_s7 = smul.u32 (%p34_p5), 480, %s185_s30 }
  0x13   : > { %s1230_s10 = scalar_lea.vmem (%p34_p5), %s1644_s0, %s961_s6 }
  0x14   : > { %v336_v0 = vld [vmem:[%s1230_s10] sm:$0xff] (%p34_p5)  ;;  %v338_v1 = vld [vmem:[%s1230_s10 + $0x10] sm:$0xff] (%p34_p5)  ;;  %s1238_s11 = scalar_lea.vmem (%p34_p5), [#allocation2], %s1034_s7 }
  0x15   : > { %v340_v2 = vld [vmem:[%s1230_s10 + $0x20] sm:$0xff] (%p34_p5)  ;;  %v342_v3 = vld [vmem:[%s1230_s10 + $0x30] sm:$0xff] (%p34_p5)  ;;  %337 = vst [vmem:[%s1238_s11] sm:$0xff] (%p34_p5), %v336_v0  ;;  %339 = vst [vmem:[%s1238_s11 + $0x8] sm:$0xff] (%p34_p5), %v338_v1 }
  0x16   : > { %v344_v4 = vld [vmem:[%s1230_s10 + $0x40] sm:$0xff]  ;;  %v346_v5 = vld [vmem:[%s1230_s10 + $0x50] sm:$0xff]  ;;  %341 = vst [vmem:[%s1238_s11 + $0x10] sm:$0xff] %v340_v2  ;;  %343 = vst [vmem:[%s1238_s11 + $0x18] sm:$0xff] %v342_v3 }
  0x17   : > { %345 = vst [vmem:[%s1238_s11 + $0x20] sm:$0xff] %v344_v4  ;;  %347 = vst [vmem:[%s1238_s11 + $0x28] sm:$0xff] %v346_v5  ;;  %v348_v6 = vld [vmem:[%s1230_s10 + $0x60] sm:$0xff]  ;;  %v350_v7 = vld [vmem:[%s1230_s10 + $0x70] sm:$0xff] }
  0x18   : > { %v352_v8 = vld [vmem:[%s1230_s10 + $0x80] sm:$0xff]  ;;  %349 = vst [vmem:[%s1238_s11 + $0x30] sm:$0xff] %v348_v6  ;;  %351 = vst [vmem:[%s1238_s11 + $0x38] sm:$0xff] %v350_v7  ;;  %v354_v9 = vld [vmem:[%s1230_s10 + $0x90] sm:$0xff] }
  0x19   : > { %353 = vst [vmem:[%s1238_s11 + $0x40] sm:$0xff] %v352_v8  ;;  %v356_v10 = vld [vmem:[%s1230_s10 + $0xa0] sm:$0xff]  ;;  %v358_v11 = vld [vmem:[%s1230_s10 + $0xb0] sm:$0xff]  ;;  %355 = vst [vmem:[%s1238_s11 + $0x48] sm:$0xff] %v354_v9 }
  0x1a   : > { %357 = vst [vmem:[%s1238_s11 + $0x50] sm:$0xff] %v356_v10  ;;  %359 = vst [vmem:[%s1238_s11 + $0x58] sm:$0xff] %v358_v11  ;;  %v360_v12 = vld [vmem:[%s1230_s10 + $0xc0] sm:$0xff]  ;;  %v362_v13 = vld [vmem:[%s1230_s10 + $0xd0] sm:$0xff] }
  0x1b   : > { %v364_v14 = vld [vmem:[%s1230_s10 + $0xe0] sm:$0xff]  ;;  %361 = vst [vmem:[%s1238_s11 + $0x60] sm:$0xff] %v360_v12  ;;  %363 = vst [vmem:[%s1238_s11 + $0x68] sm:$0xff] %v362_v13  ;;  %v366_v15 = vld [vmem:[%s1230_s10 + $0xf0] sm:$0xff] }
  0x1c   : > { %365 = vst [vmem:[%s1238_s11 + $0x70] sm:$0xff] %v364_v14  ;;  %v368_v16 = vld [vmem:[%s1230_s10 + $0x100] sm:$0xff]  ;;  %v370_v17 = vld [vmem:[%s1230_s10 + $0x110] sm:$0xff]  ;;  %367 = vst [vmem:[%s1238_s11 + $0x78] sm:$0xff] %v366_v15 }
  0x1d   : > { %369 = vst [vmem:[%s1238_s11 + $0x80] sm:$0xff] %v368_v16  ;;  %371 = vst [vmem:[%s1238_s11 + $0x88] sm:$0xff] %v370_v17  ;;  %v372_v18 = vld [vmem:[%s1230_s10 + $0x120] sm:$0xff]  ;;  %v374_v19 = vld [vmem:[%s1230_s10 + $0x130] sm:$0xff] }
  0x1e   : > { %v376_v20 = vld [vmem:[%s1230_s10 + $0x140] sm:$0xff]  ;;  %373 = vst [vmem:[%s1238_s11 + $0x90] sm:$0xff] %v372_v18  ;;  %375 = vst [vmem:[%s1238_s11 + $0x98] sm:$0xff] %v374_v19  ;;  %v378_v21 = vld [vmem:[%s1230_s10 + $0x150] sm:$0xff] }
  0x1f   : > { %377 = vst [vmem:[%s1238_s11 + $0xa0] sm:$0xff] %v376_v20  ;;  %v380_v22 = vld [vmem:[%s1230_s10 + $0x160] sm:$0xff]  ;;  %v382_v23 = vld [vmem:[%s1230_s10 + $0x170] sm:$0xff]  ;;  %379 = vst [vmem:[%s1238_s11 + $0xa8] sm:$0xff] %v378_v21 }
  0x20   : > { %381 = vst [vmem:[%s1238_s11 + $0xb0] sm:$0xff] %v380_v22  ;;  %383 = vst [vmem:[%s1238_s11 + $0xb8] sm:$0xff] %v382_v23  ;;  %v384_v24 = vld [vmem:[%s1230_s10 + $0x180] sm:$0xff]  ;;  %v386_v25 = vld [vmem:[%s1230_s10 + $0x190] sm:$0xff] }
  0x21   : > { %v388_v26 = vld [vmem:[%s1230_s10 + $0x1a0] sm:$0xff]  ;;  %385 = vst [vmem:[%s1238_s11 + $0xc0] sm:$0xff] %v384_v24  ;;  %387 = vst [vmem:[%s1238_s11 + $0xc8] sm:$0xff] %v386_v25  ;;  %v390_v27 = vld [vmem:[%s1230_s10 + $0x1b0] sm:$0xff] }
  0x22   : > { %389 = vst [vmem:[%s1238_s11 + $0xd0] sm:$0xff] %v388_v26  ;;  %v392_v28 = vld [vmem:[%s1230_s10 + $0x1c0] sm:$0xff]  ;;  %v394_v29 = vld [vmem:[%s1230_s10 + $0x1d0] sm:$0xff]  ;;  %391 = vst [vmem:[%s1238_s11 + $0xd8] sm:$0xff] %v390_v27 }
  0x23   : > { %393 = vst [vmem:[%s1238_s11 + $0xe0] sm:$0xff] %v392_v28  ;;  %395 = vst [vmem:[%s1238_s11 + $0xe8] sm:$0xff] %v394_v29  ;;  %v396_v30 = vld [vmem:[%s1230_s10 + $0x1e0] sm:$0xff]  ;;  %v398_v31 = vld [vmem:[%s1230_s10 + $0x1f0] sm:$0xff] }
  0x24   : > { %v400_v32 = vld [vmem:[%s1230_s10 + $0x200] sm:$0xff]  ;;  %397 = vst [vmem:[%s1238_s11 + $0xf0] sm:$0xff] %v396_v30  ;;  %399 = vst [vmem:[%s1238_s11 + $0xf8] sm:$0xff] %v398_v31  ;;  %v402_v33 = vld [vmem:[%s1230_s10 + $0x210] sm:$0xff] }
  0x25   : > { %401 = vst [vmem:[%s1238_s11 + $0x100] sm:$0xff] %v400_v32  ;;  %v404_v34 = vld [vmem:[%s1230_s10 + $0x220] sm:$0xff]  ;;  %v406_v35 = vld [vmem:[%s1230_s10 + $0x230] sm:$0xff]  ;;  %403 = vst [vmem:[%s1238_s11 + $0x108] sm:$0xff] %v402_v33 }
  0x26   : > { %405 = vst [vmem:[%s1238_s11 + $0x110] sm:$0xff] %v404_v34  ;;  %407 = vst [vmem:[%s1238_s11 + $0x118] sm:$0xff] %v406_v35  ;;  %v408_v36 = vld [vmem:[%s1230_s10 + $0x240] sm:$0xff]  ;;  %v410_v37 = vld [vmem:[%s1230_s10 + $0x250] sm:$0xff] }
  0x27   : > { %v412_v38 = vld [vmem:[%s1230_s10 + $0x260] sm:$0xff]  ;;  %409 = vst [vmem:[%s1238_s11 + $0x120] sm:$0xff] %v408_v36  ;;  %411 = vst [vmem:[%s1238_s11 + $0x128] sm:$0xff] %v410_v37  ;;  %v414_v39 = vld [vmem:[%s1230_s10 + $0x270] sm:$0xff] }
  0x28   : > { %413 = vst [vmem:[%s1238_s11 + $0x130] sm:$0xff] %v412_v38  ;;  %v416_v40 = vld [vmem:[%s1230_s10 + $0x280] sm:$0xff]  ;;  %v418_v41 = vld [vmem:[%s1230_s10 + $0x290] sm:$0xff]  ;;  %415 = vst [vmem:[%s1238_s11 + $0x138] sm:$0xff] %v414_v39 }
  0x29   : > { %417 = vst [vmem:[%s1238_s11 + $0x140] sm:$0xff] %v416_v40  ;;  %419 = vst [vmem:[%s1238_s11 + $0x148] sm:$0xff] %v418_v41  ;;  %v420_v42 = vld [vmem:[%s1230_s10 + $0x2a0] sm:$0xff]  ;;  %v422_v43 = vld [vmem:[%s1230_s10 + $0x2b0] sm:$0xff] }
  0x2a   : > { %v424_v44 = vld [vmem:[%s1230_s10 + $0x2c0] sm:$0xff]  ;;  %421 = vst [vmem:[%s1238_s11 + $0x150] sm:$0xff] %v420_v42  ;;  %423 = vst [vmem:[%s1238_s11 + $0x158] sm:$0xff] %v422_v43  ;;  %v426_v45 = vld [vmem:[%s1230_s10 + $0x2d0] sm:$0xff] }
  0x2b   : > { %425 = vst [vmem:[%s1238_s11 + $0x160] sm:$0xff] %v424_v44  ;;  %v428_v46 = vld [vmem:[%s1230_s10 + $0x2e0] sm:$0xff]  ;;  %v430_v47 = vld [vmem:[%s1230_s10 + $0x2f0] sm:$0xff]  ;;  %427 = vst [vmem:[%s1238_s11 + $0x168] sm:$0xff] %v426_v45 }
  0x2c   : > { %429 = vst [vmem:[%s1238_s11 + $0x170] sm:$0xff] %v428_v46  ;;  %431 = vst [vmem:[%s1238_s11 + $0x178] sm:$0xff] %v430_v47  ;;  %v432_v48 = vld [vmem:[%s1230_s10 + $0x300] sm:$0xff]  ;;  %v434_v49 = vld [vmem:[%s1230_s10 + $0x310] sm:$0xff] }
  0x2d   : > { %v436_v50 = vld [vmem:[%s1230_s10 + $0x320] sm:$0xff]  ;;  %433 = vst [vmem:[%s1238_s11 + $0x180] sm:$0xff] %v432_v48  ;;  %435 = vst [vmem:[%s1238_s11 + $0x188] sm:$0xff] %v434_v49  ;;  %v438_v51 = vld [vmem:[%s1230_s10 + $0x330] sm:$0xff] }
  0x2e   : > { %437 = vst [vmem:[%s1238_s11 + $0x190] sm:$0xff] %v436_v50  ;;  %v440_v52 = vld [vmem:[%s1230_s10 + $0x340] sm:$0xff]  ;;  %v442_v53 = vld [vmem:[%s1230_s10 + $0x350] sm:$0xff]  ;;  %439 = vst [vmem:[%s1238_s11 + $0x198] sm:$0xff] %v438_v51 }
  0x2f   : > { %441 = vst [vmem:[%s1238_s11 + $0x1a0] sm:$0xff] %v440_v52  ;;  %443 = vst [vmem:[%s1238_s11 + $0x1a8] sm:$0xff] %v442_v53  ;;  %v444_v54 = vld [vmem:[%s1230_s10 + $0x360] sm:$0xff]  ;;  %v446_v55 = vld [vmem:[%s1230_s10 + $0x370] sm:$0xff] }
  0x30   : > { %v448_v56 = vld [vmem:[%s1230_s10 + $0x380] sm:$0xff]  ;;  %445 = vst [vmem:[%s1238_s11 + $0x1b0] sm:$0xff] %v444_v54  ;;  %447 = vst [vmem:[%s1238_s11 + $0x1b8] sm:$0xff] %v446_v55  ;;  %v450_v57 = vld [vmem:[%s1230_s10 + $0x390] sm:$0xff] }
  0x31   : > { %449 = vst [vmem:[%s1238_s11 + $0x1c0] sm:$0xff] %v448_v56  ;;  %v452_v58 = vld [vmem:[%s1230_s10 + $0x3a0] sm:$0xff]  ;;  %v454_v59 = vld [vmem:[%s1230_s10 + $0x3b0] sm:$0xff]  ;;  %451 = vst [vmem:[%s1238_s11 + $0x1c8] sm:$0xff] %v450_v57 }
  0x32   : > { %453 = vst [vmem:[%s1238_s11 + $0x1d0] sm:$0xff] %v452_v58  ;;  %455 = vst [vmem:[%s1238_s11 + $0x1d8] sm:$0xff] %v454_v59 }
  0x33 PF: > { %p962_p10 = scmp.ge.s32.totalorder %s1141_s21, 1  ;;  %p460_p11 = scmp.lt.s32.totalorder %s1141_s21, 3 }
  0x35   : > { %p461_p12 = pnand %p962_p10, %p460_p11 }
  0x36   : > { %s1366_s23 = sand.u32 (!%p461_p12), 1, %s1133_s19   ;;  %s1145_s26 = smov (!%p461_p12), [#allocation3]  }
  0x37   : > { %464 = sbr.rel (%p461_p12) target bundleno = 630 (0x276), region = 74  ;;  %s963_s11 = sshll.u32 (!%p461_p12), %s1366_s23, 3 }
  0x38   : > { %s1035_s9 = smul.u32 (!%p461_p12), 480, %s1366_s23  ;;  %s493_s12 = scalar_lea.vmem (!%p461_p12), [#allocation3], %s963_s11 }
  0x39   : > { %s893_s13 = sshll.u32 (!%p461_p12), %s493_s12, 4  ;;  %s880_s17 = scalar_lea.sflag (!%p461_p12), [#allocation4], %s1366_s23  ;;  %s894_s13 = int_to_ptr.vmem [resolvable:$true] %s893_s13 }
  0x3a   : > { %s1406_s14 = scalar_lea.vmem (!%p461_p12), [#allocation2], %s1035_s9  ;;  %s1081_s25 = scalar_lea.vmem (!%p461_p12), %s894_s13, 128 }
  0x3b   : > { %p1082_p13 = scmp.ne.s32.totalorder (!%p461_p12), %s894_s13, %s1081_s25  ;;  %s1085_s30 = sshll.u32 (!%p461_p12), %s1145_s26, 4  ;;  %s1086_s30 = int_to_ptr.vmem [resolvable:$false] %s1085_s30 }
  0x3c   : > { %v705_v60 = vld [vmem:[%s1645_s1 + $0xf8] sm:$0xff]  ;;  %v704_v62 = vld [vmem:[%s1645_s1 + $0xf0] sm:$0xff]  ;;  %v703_v0 = vld [vmem:[%s1645_s1 + $0xe8] sm:$0xff]  ;;  %v1143_v4 = vmov 0.0   ;;  %vm1144_vm0 = vmmov 0   ;;  %vm799_vm1 = vcmask 523264   ;;  %p1088_p2 = scmp.lt.s32.totalorder %s894_s13, %s1086_s30 }
  0x3d   : > { %v689_v61 = vld [vmem:[%s1645_s1 + $0x78] sm:$0xff]  ;;  %971 = vmatprep.subr.mxu0 %v705_v60  ;;  %v688_v63 = vld [vmem:[%s1645_s1 + $0x70] sm:$0xff]  ;;  %v687_v1 = vld [vmem:[%s1645_s1 + $0x68] sm:$0xff]  ;;  %1015 = vmatprep.subr.mxu1 %v1143_v4  ;;  %p1083_p0 = pnand %p1082_p13, %p1214_p6 }
  0x3e   : > { %972 = vmatpush3.msra.mxu0 %v689_v61  ;;  %v702_v2 = vld [vmem:[%s1645_s1 + $0xe0] sm:$0xff]  ;;  %v701_v5 = vld [vmem:[%s1645_s1 + $0xd8] sm:$0xff]  ;;  %v700_v7 = vld [vmem:[%s1645_s1 + $0xd0] sm:$0xff]  ;;  %1031 = vmatprep.mubr.msk.f32.mxu1 %vm1144_vm0, %v1143_v4 }
  0x3f   : > { %973 = vmatprep.subr.mxu0 %v704_v62  ;;  %v686_v3 = vld [vmem:[%s1645_s1 + $0x60] sm:$0xff]  ;;  %v685_v6 = vld [vmem:[%s1645_s1 + $0x58] sm:$0xff]  ;;  %v684_v8 = vld [vmem:[%s1645_s1 + $0x50] sm:$0xff]  ;;  %p1084_p1 = pneg %p1083_p0 }
  0x40   : > { %974 = vmatpush3.msra.mxu0 %v688_v63  ;;  %v699_v9 = vld [vmem:[%s1645_s1 + $0xc8] sm:$0xff]  ;;  %v698_v11 = vld [vmem:[%s1645_s1 + $0xc0] sm:$0xff]  ;;  %v1418_v15 = vld [vmem:[%s1406_s14 + $0x10] sm:$0xff] }
  0x41   : > { %975 = vmatprep.subr.mxu0 %v703_v0  ;;  %v683_v10 = vld [vmem:[%s1645_s1 + $0x48] sm:$0xff]  ;;  %v1409_v12 = vld [vmem:[%s1406_s14] sm:$0xff]  ;;  %v1421_v16 = vld [vmem:[%s1406_s14 + $0x18] sm:$0xff] }
  0x42   : > { %976 = vmatpush3.msra.mxu0 %v687_v1  ;;  %v682_v13 = vld [vmem:[%s1645_s1 + $0x40] sm:$0xff]  ;;  %v1415_v14 = vld [vmem:[%s1406_s14 + $0x8] sm:$0xff]  ;;  %v1430_v19 = vld [vmem:[%s1406_s14 + $0x30] sm:$0xff] }
  0x43   : > { %977 = vmatprep.subr.mxu0 %v702_v2  ;;  %v1424_v17 = vld [vmem:[%s1406_s14 + $0x20] sm:$0xff]  ;;  %v1427_v18 = vld [vmem:[%s1406_s14 + $0x28] sm:$0xff]  ;;  %v554_v20 = vadd.f32 %v1415_v14, %v1409_v12  ;;  %v1435_v21 = vld [vmem:[%s1406_s14 + $0x38] sm:$0xff]  ;;  %v617_v26 = vmax.f32 %v1418_v15, %v1430_v19 }
  0x44   : > { %978 = vmatpush3.msra.mxu0 %v686_v3  ;;  %v502_v22 = vld [vmem:[%s1406_s14 + $0x40] sm:$0xff]  ;;  %v503_v23 = vld [vmem:[%s1406_s14 + $0x48] sm:$0xff]  ;;  %v615_v24 = vmax.f32 %v1409_v12, %v1424_v17  ;;  %v616_v25 = vmax.f32 %v1415_v14, %v1427_v18  ;;  %v697_v27 = vld [vmem:[%s1645_s1 + $0xb8] sm:$0xff]  ;;  %v618_v31 = vmax.f32 %v1421_v16, %v1435_v21 }
  0x45   : > { %979 = vmatprep.subr.mxu0 %v701_v5  ;;  %v619_v28 = vmax.f32 %v503_v23, %v502_v22  ;;  %v504_v29 = vld [vmem:[%s1406_s14 + $0x50] sm:$0xff]  ;;  %v555_v30 = vadd.f32 %v554_v20, %v1418_v15  ;;  %v681_v32 = vld [vmem:[%s1645_s1 + $0x38] sm:$0xff]  ;;  %v506_v38 = vld [vmem:[%s1406_s14 + $0x60] sm:$0xff] }
  0x46   : > { %980 = vmatpush3.msra.mxu0 %v685_v6  ;;  %v505_v33 = vld [vmem:[%s1406_s14 + $0x58] sm:$0xff]  ;;  %v696_v34 = vld [vmem:[%s1645_s1 + $0xb0] sm:$0xff]  ;;  %v695_v39 = vld [vmem:[%s1645_s1 + $0xa8] sm:$0xff] }
  0x47   : > { %981 = vmatprep.subr.mxu0 %v700_v7  ;;  %v620_v35 = vmax.f32 %v504_v29, %v619_v28  ;;  %v556_v36 = vadd.f32 %v555_v30, %v1421_v16  ;;  %v680_v37 = vld [vmem:[%s1645_s1 + $0x30] sm:$0xff]  ;;  %v679_v42 = vld [vmem:[%s1645_s1 + $0x28] sm:$0xff]  ;;  %v694_v44 = vld [vmem:[%s1645_s1 + $0xa0] sm:$0xff] }
  0x48   : > { %982 = vmatpush3.msra.mxu0 %v684_v8  ;;  %v507_v43 = vld [vmem:[%s1406_s14 + $0x68] sm:$0xff]  ;;  %v678_v47 = vld [vmem:[%s1645_s1 + $0x20] sm:$0xff]  ;;  %v508_v48 = vld [vmem:[%s1406_s14 + $0x70] sm:$0xff] }
  0x49   : > { %983 = vmatprep.subr.mxu0 %v699_v9  ;;  %v621_v40 = vmax.f32 %v505_v33, %v620_v35  ;;  %v557_v41 = vadd.f32 %v556_v36, %v1424_v17  ;;  %v693_v49 = vld [vmem:[%s1645_s1 + $0x98] sm:$0xff]  ;;  %v692_v54 = vld [vmem:[%s1645_s1 + $0x90] sm:$0xff]  ;;  %v510_v58 = vld [vmem:[%s1406_s14 + $0x80] sm:$0xff] }
  0x4a   : > { %984 = vmatpush3.msra.mxu0 %v683_v10  ;;  %v677_v52 = vld [vmem:[%s1645_s1 + $0x18] sm:$0xff]  ;;  %v676_v57 = vld [vmem:[%s1645_s1 + $0x10] sm:$0xff]  ;;  %v691_v59 = vld [vmem:[%s1645_s1 + $0x88] sm:$0xff] }
  0x4b   : > { %985 = vmatprep.subr.mxu0 %v698_v11  ;;  %v622_v45 = vmax.f32 %v506_v38, %v621_v40  ;;  %v558_v46 = vadd.f32 %v557_v41, %v1427_v18  ;;  %v509_v53 = vld [vmem:[%s1406_s14 + $0x78] sm:$0xff]  ;;  %v675_v62 = vld [vmem:[%s1645_s1 + $0x8] sm:$0xff]  ;;  %v690_v0 = vld [vmem:[%s1645_s1 + $0x80] sm:$0xff] }
  0x4c   : > { %986 = vmatpush3.msra.mxu0 %v682_v13  ;;  %v511_v63 = vld [vmem:[%s1406_s14 + $0x88] sm:$0xff]  ;;  %v674_v3 = vld [vmem:[%s1645_s1] sm:$0xff]  ;;  %v512_v5 = vld [vmem:[%s1406_s14 + $0x90] sm:$0xff] }
  0x4d   : > { %987 = vmatprep.subr.mxu0 %v697_v27  ;;  %v623_v50 = vmax.f32 %v507_v43, %v622_v45  ;;  %v559_v51 = vadd.f32 %v558_v46, %v1430_v19  ;;  %v791_v8 = vld [vmem:[%s1647_s3 + $0x38] sm:$0xff]  ;;  %v790_v10 = vld [vmem:[%s1647_s3 + $0x30] sm:$0xff]  ;;  %v789_v20 = vld [vmem:[%s1647_s3 + $0x28] sm:$0xff] }
  0x4e   : > { %988 = vmatpush3.msra.mxu0 %v681_v32  ;;  %v513_v9 = vld [vmem:[%s1406_s14 + $0x98] sm:$0xff]  ;;  %1016 = vmatpush3.msra.mxu1 %v791_v8  ;;  %v515_v28 = vld [vmem:[%s1406_s14 + $0xa8] sm:$0xff]  ;;  %v516_v32 = vld [vmem:[%s1406_s14 + $0xb0] sm:$0xff] }
  0x4f   : > { %989 = vmatprep.subr.mxu0 %v696_v34  ;;  %v624_v55 = vmax.f32 %v508_v48, %v623_v50  ;;  %v560_v56 = vadd.f32 %v559_v51, %v1435_v21  ;;  %1017 = vmatprep.subr.mxu1 %v1143_v4  ;;  %v517_v35 = vld [vmem:[%s1406_s14 + $0xb8] sm:$0xff]  ;;  %v519_v41 = vld [vmem:[%s1406_s14 + $0xc8] sm:$0xff]  ;;  %v522_v50 = vld [vmem:[%s1406_s14 + $0xe0] sm:$0xff] }
  0x50   : > { %990 = vmatpush3.msra.mxu0 %v680_v37  ;;  %1018 = vmatpush3.msra.mxu1 %v790_v10  ;;  %v529_v8 = vld [vmem:[%s1406_s14 + $0x118] sm:$0xff]  ;;  %v788_v14 = vld [vmem:[%s1647_s3 + $0x20] sm:$0xff]  ;;  %v786_v16 = vld [vmem:[%s1647_s3 + $0x10] sm:$0xff] }
  0x51   : > { %991 = vmatprep.subr.mxu0 %v695_v39  ;;  %v625_v60 = vmax.f32 %v509_v53, %v624_v55  ;;  %v561_v61 = vadd.f32 %v560_v56, %v502_v22  ;;  %v514_v22 = vld [vmem:[%s1406_s14 + $0xa0] sm:$0xff]  ;;  %1019 = vmatprep.subr.mxu1 %v1143_v4  ;;  %v524_v56 = vld [vmem:[%s1406_s14 + $0xf0] sm:$0xff]  ;;  %v787_v15 = vld [vmem:[%s1647_s3 + $0x18] sm:$0xff] }
  0x52   : > { %992 = vmatpush3.msra.mxu0 %v679_v42  ;;  %1020 = vmatpush3.msra.mxu1 %v789_v20  ;;  %v785_v18 = vld [vmem:[%s1647_s3 + $0x8] sm:$0xff]  ;;  %v784_v19 = vld [vmem:[%s1647_s3] sm:$0xff] }
  0x53   : > { %993 = vmatprep.subr.mxu0 %v694_v44  ;;  %v626_v1 = vmax.f32 %v510_v58, %v625_v60  ;;  %v562_v2 = vadd.f32 %v561_v61, %v503_v23  ;;  %1021 = vmatprep.subr.mxu1 %v1143_v4 }
  0x54   : > { %994 = vmatpush3.msra.mxu0 %v678_v47  ;;  %v521_v47 = vld [vmem:[%s1406_s14 + $0xd8] sm:$0xff]  ;;  %1022 = vmatpush3.msra.mxu1 %v788_v14 }
  0x55   : > { %995 = vmatprep.subr.mxu0 %v693_v49  ;;  %v627_v6 = vmax.f32 %v511_v63, %v626_v1  ;;  %v563_v7 = vadd.f32 %v562_v2, %v504_v29  ;;  %v527_v1 = vld [vmem:[%s1406_s14 + $0x108] sm:$0xff]  ;;  %1023 = vmatprep.subr.mxu1 %v1143_v4 }
  0x56   : > { %996 = vmatpush3.msra.mxu0 %v677_v52  ;;  %1024 = vmatpush3.msra.mxu1 %v787_v15 }
  0x57   : > { %997 = vmatprep.subr.mxu0 %v692_v54  ;;  %v628_v11 = vmax.f32 %v512_v5, %v627_v6  ;;  %v564_v13 = vadd.f32 %v563_v7, %v505_v33  ;;  %1025 = vmatprep.subr.mxu1 %v1143_v4 }
  0x58   : > { %998 = vmatpush3.msra.mxu0 %v676_v57  ;;  %1026 = vmatpush3.msra.mxu1 %v786_v16 }
  0x59   : > { %999 = vmatprep.subr.mxu0 %v691_v59  ;;  %v629_v23 = vmax.f32 %v513_v9, %v628_v11  ;;  %v565_v27 = vadd.f32 %v564_v13, %v506_v38  ;;  %v518_v38 = vld [vmem:[%s1406_s14 + $0xc0] sm:$0xff]  ;;  %v525_v59 = vld [vmem:[%s1406_s14 + $0xf8] sm:$0xff]  ;;  %1027 = vmatprep.subr.mxu1 %v1143_v4 }
  0x5a   : > { %1000 = vmatpush3.msra.mxu0 %v675_v62  ;;  %v526_v62 = vld [vmem:[%s1406_s14 + $0x100] sm:$0xff]  ;;  %1028 = vmatpush3.msra.mxu1 %v785_v18 }
  0x5b   : > { %1001 = vmatprep.subr.mxu0 %v690_v0  ;;  %v630_v29 = vmax.f32 %v514_v22, %v629_v23  ;;  %v566_v30 = vadd.f32 %v565_v27, %v507_v43  ;;  %v520_v43 = vld [vmem:[%s1406_s14 + $0xd0] sm:$0xff]  ;;  %v530_v11 = vld [vmem:[%s1406_s14 + $0x120] sm:$0xff]  ;;  %1029 = vmatprep.subr.mxu1 %v1143_v4 }
  0x5c   : > { %1002 = vmatpush3.msra.mxu0 %v674_v3  ;;  %1030 = vmatpush3.msra.mxu1 %v784_v19 }
  0x5d   : > { %v631_v33 = vmax.f32 %v515_v28, %v630_v29  ;;  %v567_v34 = vadd.f32 %v566_v30, %v508_v48 }
  0x5f   : > { %v632_v36 = vmax.f32 %v516_v32, %v631_v33  ;;  %v568_v37 = vadd.f32 %v567_v34, %v509_v53  ;;  %v523_v53 = vld [vmem:[%s1406_s14 + $0xe8] sm:$0xff] }
  0x61   : > { %v633_v39 = vmax.f32 %v517_v35, %v632_v36  ;;  %v569_v40 = vadd.f32 %v568_v37, %v510_v58 }
  0x63   : > { %v634_v42 = vmax.f32 %v518_v38, %v633_v39  ;;  %v570_v44 = vadd.f32 %v569_v40, %v511_v63 }
  0x65   : > { %v635_v45 = vmax.f32 %v519_v41, %v634_v42  ;;  %v571_v46 = vadd.f32 %v570_v44, %v512_v5  ;;  %v528_v5 = vld [vmem:[%s1406_s14 + $0x110] sm:$0xff] }
  0x67   : > { %v636_v49 = vmax.f32 %v520_v43, %v635_v45  ;;  %v572_v48 = vadd.f32 %v571_v46, %v513_v9 }
  0x69   : > { %v637_v51 = vmax.f32 %v521_v47, %v636_v49  ;;  %v573_v52 = vadd.f32 %v572_v48, %v514_v22  ;;  %v531_v22 = vld [vmem:[%s1406_s14 + $0x128] sm:$0xff] }
  0x6b   : > { %v638_v54 = vmax.f32 %v522_v50, %v637_v51  ;;  %v574_v55 = vadd.f32 %v573_v52, %v515_v28  ;;  %v532_v28 = vld [vmem:[%s1406_s14 + $0x130] sm:$0xff] }
  0x6d   : > { %v639_v57 = vmax.f32 %v523_v53, %v638_v54  ;;  %v575_v58 = vadd.f32 %v574_v55, %v516_v32  ;;  %v533_v32 = vld [vmem:[%s1406_s14 + $0x138] sm:$0xff] }
  0x6f   : > { %v640_v60 = vmax.f32 %v524_v56, %v639_v57  ;;  %v576_v61 = vadd.f32 %v575_v58, %v517_v35  ;;  %v534_v35 = vld [vmem:[%s1406_s14 + $0x140] sm:$0xff] }
  0x71   : > { %v641_v63 = vmax.f32 %v525_v59, %v640_v60  ;;  %v577_v0 = vadd.f32 %v576_v61, %v518_v38  ;;  %v535_v38 = vld [vmem:[%s1406_s14 + $0x148] sm:$0xff] }
  0x73   : > { %v642_v2 = vmax.f32 %v526_v62, %v641_v63  ;;  %v578_v3 = vadd.f32 %v577_v0, %v519_v41  ;;  %v536_v41 = vld [vmem:[%s1406_s14 + $0x150] sm:$0xff] }
  0x75   : > { %v643_v6 = vmax.f32 %v527_v1, %v642_v2  ;;  %v579_v7 = vadd.f32 %v578_v3, %v520_v43  ;;  %v537_v43 = vld [vmem:[%s1406_s14 + $0x158] sm:$0xff] }
  0x77   : > { %v644_v9 = vmax.f32 %v528_v5, %v643_v6  ;;  %v580_v10 = vadd.f32 %v579_v7, %v521_v47  ;;  %v538_v47 = vld [vmem:[%s1406_s14 + $0x160] sm:$0xff] }
  0x79   : > { %v645_v13 = vmax.f32 %v529_v8, %v644_v9  ;;  %v581_v20 = vadd.f32 %v580_v10, %v522_v50  ;;  %v539_v50 = vld [vmem:[%s1406_s14 + $0x168] sm:$0xff] }
  0x7b   : > { %v646_v23 = vmax.f32 %v530_v11, %v645_v13  ;;  %v582_v27 = vadd.f32 %v581_v20, %v523_v53  ;;  %v540_v53 = vld [vmem:[%s1406_s14 + $0x170] sm:$0xff] }
  0x7d   : > { %v647_v29 = vmax.f32 %v531_v22, %v646_v23  ;;  %v583_v30 = vadd.f32 %v582_v27, %v524_v56  ;;  %v541_v56 = vld [vmem:[%s1406_s14 + $0x178] sm:$0xff] }
  0x7f   : > { %v648_v33 = vmax.f32 %v532_v28, %v647_v29  ;;  %v584_v34 = vadd.f32 %v583_v30, %v525_v59  ;;  %v542_v59 = vld [vmem:[%s1406_s14 + $0x180] sm:$0xff] }
  0x81   : > { %v649_v36 = vmax.f32 %v533_v32, %v648_v33  ;;  %v585_v37 = vadd.f32 %v584_v34, %v526_v62  ;;  %v543_v62 = vld [vmem:[%s1406_s14 + $0x188] sm:$0xff] }
  0x83   : > { %v650_v39 = vmax.f32 %v534_v35, %v649_v36  ;;  %v586_v40 = vadd.f32 %v585_v37, %v527_v1  ;;  %v544_v1 = vld [vmem:[%s1406_s14 + $0x190] sm:$0xff] }
  0x85   : > { %v651_v42 = vmax.f32 %v535_v38, %v650_v39  ;;  %v587_v44 = vadd.f32 %v586_v40, %v528_v5  ;;  %v545_v5 = vld [vmem:[%s1406_s14 + $0x198] sm:$0xff] }
  0x87   : > { %v652_v45 = vmax.f32 %v536_v41, %v651_v42  ;;  %v588_v46 = vadd.f32 %v587_v44, %v529_v8  ;;  %v546_v8 = vld [vmem:[%s1406_s14 + $0x1a0] sm:$0xff] }
  0x89   : > { %v653_v49 = vmax.f32 %v537_v43, %v652_v45  ;;  %v589_v48 = vadd.f32 %v588_v46, %v530_v11  ;;  %v547_v11 = vld [vmem:[%s1406_s14 + $0x1a8] sm:$0xff] }
  0x8b   : > { %v654_v51 = vmax.f32 %v538_v47, %v653_v49  ;;  %v590_v52 = vadd.f32 %v589_v48, %v531_v22  ;;  %v548_v22 = vld [vmem:[%s1406_s14 + $0x1b0] sm:$0xff] }
  0x8d   : > { %v655_v54 = vmax.f32 %v539_v50, %v654_v51  ;;  %v591_v55 = vadd.f32 %v590_v52, %v532_v28  ;;  %v549_v28 = vld [vmem:[%s1406_s14 + $0x1b8] sm:$0xff] }
  0x8f   : > { %v656_v57 = vmax.f32 %v540_v53, %v655_v54  ;;  %v592_v58 = vadd.f32 %v591_v55, %v533_v32  ;;  %v550_v32 = vld [vmem:[%s1406_s14 + $0x1c0] sm:$0xff] }
  0x91   : > { %v657_v60 = vmax.f32 %v541_v56, %v656_v57  ;;  %v593_v61 = vadd.f32 %v592_v58, %v534_v35  ;;  %v551_v35 = vld [vmem:[%s1406_s14 + $0x1c8] sm:$0xff]  ;;  %v965_v57 = vld [vmem:[%s1648_s4] ss:$0 sm:$0xff] }
  0x93   : > { %v658_v63 = vmax.f32 %v542_v59, %v657_v60  ;;  %v594_v0 = vadd.f32 %v593_v61, %v535_v38  ;;  %v552_v38 = vld [vmem:[%s1406_s14 + $0x1d0] sm:$0xff] }
  0x95   : > { %v659_v2 = vmax.f32 %v543_v62, %v658_v63  ;;  %v595_v3 = vadd.f32 %v594_v0, %v536_v41  ;;  %v553_v41 = vld [vmem:[%s1406_s14 + $0x1d8] sm:$0xff]  ;;  %s968_s14 = sshll.u32 %s957_s22, 7  ;;  %s1087_s22 = scalar_lea.vmem %s1086_s30, 256 }
  0x96   : > { %s1607_s9 = scalar_lea.hbm %s1649_s5, %s968_s14  ;;  %p1089_p3 = scmp.lt.s32.totalorder %s1087_s22, %s1081_s25 }
  0x97   : > { %v660_v6 = vmax.f32 %v544_v1, %v659_v2  ;;  %v596_v7 = vadd.f32 %v595_v3, %v537_v43 }
  0x98   : > { %p1090_p4 = por %p1089_p3, %p1088_p2 }
  0x99   : > { %v661_v9 = vmax.f32 %v545_v5, %v660_v6  ;;  %v597_v10 = vadd.f32 %v596_v7, %v538_v47 }
  0x9a   : > { %p1091_p5 = pnand %p1090_p4, %p1084_p1 }
  0x9b   : > { %v662_v13 = vmax.f32 %v546_v8, %v661_v9  ;;  %v598_v20 = vadd.f32 %v597_v10, %v539_v50 }
  0x9d   : > { %v663_v23 = vmax.f32 %v547_v11, %v662_v13  ;;  %v599_v27 = vadd.f32 %v598_v20, %v540_v53 }
  0x9f   : > { %v664_v29 = vmax.f32 %v548_v22, %v663_v23  ;;  %v600_v30 = vadd.f32 %v599_v27, %v541_v56 }
  0xa1   : > { %v665_v33 = vmax.f32 %v549_v28, %v664_v29  ;;  %v601_v34 = vadd.f32 %v600_v30, %v542_v59 }
  0xa3   : > { %v666_v36 = vmax.f32 %v550_v32, %v665_v33  ;;  %v602_v37 = vadd.f32 %v601_v34, %v543_v62 }
  0xa5   : > { %v667_v39 = vmax.f32 %v551_v35, %v666_v36  ;;  %v603_v40 = vadd.f32 %v602_v37, %v544_v1 }
  0xa7   : > { %v668_v42 = vmax.f32 %v552_v38, %v667_v39  ;;  %v604_v44 = vadd.f32 %v603_v40, %v545_v5 }
  0xa9   : > { %v669_v43 = vmax.f32 %v553_v41, %v668_v42  ;;  %v605_v45 = vadd.f32 %v604_v44, %v546_v8 }
  0xab   : > { %v606_v46 = vadd.f32 %v605_v45, %v547_v11  ;;  %v670_v47 = vmax.f32 %v615_v24, %v669_v43  ;;  %v964_v24 = vld [vmem:[%s1646_s2] ss:$0 sm:$0xff] }
  0xad   : > { %v607_v49 = vadd.f32 %v606_v46, %v548_v22  ;;  %v671_v48 = vmax.f32 %v616_v25, %v670_v47 }
  0xaf   : > { %v608_v50 = vadd.f32 %v607_v49, %v549_v28  ;;  %v672_v51 = vmax.f32 %v617_v26, %v671_v48 }
  0xb1   : > { %v609_v52 = vadd.f32 %v608_v50, %v550_v32  ;;  %v673_v53 = vmax.f32 %v618_v31, %v672_v51 }
  0xb3   : > { %v610_v54 = vadd.f32 %v609_v52, %v551_v35  ;;  %777 = vmatprep.mubr.f32.mxu0 %v673_v53 }
  0xb5   : > { %v611_v55 = vadd.f32 %v610_v54, %v552_v38 }
  0xb7   : > { %v612_v12 = vadd.f32 %v611_v55, %v553_v41 }
  0xb9   : > { %v614_v17 = vmul.f32 0.016666668, %v612_v12 }
  0xbb   : > { %778 = vmatmul.mubr.f32.vlgmr.msra.gmra.mxu0 %v614_v17 }
 0x17b   : > { %v1003_v21 = vpop.f32.mrf.mxu0 }
 0x17d   : > { %v1004_v25 = vpop.f32.mrf.mxu0 }
 0x17e   : > { %v1005_v26 = vadd.f32 %v1004_v25, %v1003_v21 }
 0x180   : > { %v780_v31 = vadd.f32 %v1005_v26, %v964_v24 }
 0x182   : > { %v783_v56 = vmax.f32 %v780_v31, 0.0 }
 0x184   : > { %1032 = vmatmul.mubr.msk.f32.vlgmr.msra.gmra.mxu1 %vm799_vm1, %v783_v56 }
 0x244   : > { %v869_v58 = vpop.f32.mrf.mxu1 }
 0x245   : > { %v870_v59 = vadd.f32 %v965_v57, %v869_v58 }
 0x246   : > { %v1033_v4 = vpop.f32.mrf.mxu1 }
 0x247   : > { %v873_v60 = vsub.f32 0.0, %v870_v59 }
 0x249   : > { %v874_v61 = vmul.f32 1.442695, %v873_v60 }
 0x24b   : > { %1077 = vpow2.f32 %v874_v61 }
 0x258   : > { %v1078_v62 = vpop.eup %1077 }
 0x259   : > { %v876_v63 = vadd.f32 1.0, %v1078_v62 }
 0x25b   : > { %1079 = vrcp.f32 %v876_v63 }
 0x268   : > { %v1080_v0 = vpop.eup %1079 }
 0x269   : > { %878 = vst [vmem:[%s493_s12] sm:$0xff] %v1080_v0 }
 0x26a   : > { %1094 = shalt.err (!%p1091_p5)
}
 0x26b   : > { %s1095_s6 = scalar_lea.hbm %s1607_s9, 128  ;;  %s1099_s8 = scalar_lea.hbm %s1649_s5, 256 }
 0x26c   : > { %p1096_p7 = scmp.ne.s32.totalorder %s1607_s9, %s1095_s6  ;;  %p1100_p12 = scmp.lt.s32.totalorder %s1607_s9, %s1649_s5 }
 0x26d   : > { %p1101_p13 = scmp.lt.s32.totalorder %s1099_s8, %s1095_s6 }
 0x26e   : > { %p1097_p10 = pnand %p1096_p7, %p1214_p6 }
 0x26f   : > { %p1102_p0 = por %p1101_p13, %p1100_p12 }
 0x270   : > { %p1098_p11 = pneg %p1097_p10 }
 0x272   : > { %p1103_p1 = pnand %p1102_p0, %p1098_p11 }
 0x274   : > { %1106 = shalt.err (!%p1103_p1)
}
 0x275   : > { %1036 = dma.vmem_to_hbm [thread:$0]  (%p1214_p6), %s894_s13, 128, %s1607_s9, %s880_s17  }
 0x276 PF: > { %s905_s14 = sand.u32 1, %s1129_s18   ;;  %p1039_p2 = pnand %p960_p9, %p1218_p8 }
 0x277   : > { %s906_s12 = scalar_lea.sflag [#allocation4], %s905_s14 }
 0x278   : > { %p1040_p3 = pneg %p1039_p2 }
 0x27a   : > { %1124 = dma.done.wait (%p1040_p3), %s906_s12, 128  }
 0x27b   : > { %1126 = vsyncadd (%p1040_p3), %s906_s12, 4294967168  ;;  %p15_p4 = scmp.ge.s32.totalorder %s1199_s24, 4   ;;  %s1652_s18 = smov %s1133_s19 }
 0x27c   : > { %s1653_s19 = smov %s1137_s20  ;;  %s1654_s20 = smov %s1212_s27 }
 0x27d   : > { %s1655_s21 = smov %s1199_s24  ;;  %17 = sbr.rel (!%p15_p4) target bundleno = 3 (0x3), region = 118 }
 0x282   :  { %911 = vsyncpa [#allocation4], 1 }
 0x283   :  { %913 = vsyncpa [#allocation4 + $0x1], 1 }

</bundles_post_ra>
